<compile_context>
chip_gen: v7x
topology: tpu7x:2x2x1
jax: 0.10.0
libtpu: 0.0.40
codegen_flags: <defaults>
</compile_context>

<pallas_src>
import functools

import numpy as np
import jax
import jax.numpy as jnp
from jax import lax
from jax.experimental import pallas as pl
from jax.experimental.pallas import tpu as pltpu


# ---------------------------------------------------------------------------
# Parameter setup (mirrors PositionEncoding.__init__); cast ONCE here.
# ---------------------------------------------------------------------------
def make_position_encoding(max_length: int, embedding_dim: int,
                           dtype=jnp.float32) -> jnp.ndarray:
    """Returns encoding of shape (max_length, 1, embedding_dim)."""
    pos = jnp.arange(max_length, dtype=jnp.float32)[:, None]          # (L, 1)
    two_i = jnp.arange(0, embedding_dim, 2, dtype=jnp.float32)        # (D/2,)
    angle = pos / jnp.power(1000.0, two_i / float(embedding_dim))     # (L, D/2)
    enc = jnp.zeros((max_length, embedding_dim), dtype=jnp.float32)
    enc = enc.at[:, 0::2].set(jnp.sin(angle))
    enc = enc.at[:, 1::2].set(jnp.cos(angle))
    return enc[:, None, :].astype(dtype)                              # (L, 1, D)


# ---------------------------------------------------------------------------
# Counter-based hash constants (lowbias32-style finalizer), as int32 literals.
# ---------------------------------------------------------------------------
def _i32(x: int) -> int:
    x &= 0xFFFFFFFF
    return x - (1 << 32) if x >= (1 << 31) else x


_C1 = _i32(0x9E3779B9)   # golden-ratio increment (mixes element index)
_C2 = _i32(0xC2B2AE35)   # multiplicative seed mix
_C3 = _i32(0x21F0AAAD)
_C4 = _i32(0x735A2D97)


def _shr(x, n):
    """Logical right shift of an int32 array by a static amount."""
    return lax.shift_right_logical(x, jnp.int32(n))


# ---------------------------------------------------------------------------
# Pallas kernels
# ---------------------------------------------------------------------------
def _add_posenc_kernel(x_ref, enc_ref, o_ref):
    # x_ref: (ts, B, D); enc_ref: (ts, 1, D) -> broadcast add over batch.
    o_ref[...] = (x_ref[...] + enc_ref[...]).astype(o_ref.dtype)


def _add_posenc_dropout_kernel(seed_ref, x_ref, enc_ref, o_ref, *,
                               keep_threshold, inv_keep):
    # Training-mode inverted dropout, fused with the positional add.
    # Keep decision: a per-element 32-bit hash of (global index, seed) compared
    # (as signed int32) against a threshold chosen so P(keep) = 1 - rate.
    # NOTE: the RNG stream intentionally differs from torch's dropout RNG, and
    # keep probability is quantized to multiples of 2^-32 (rates < ~2^-33
    # effectively disable dropout).
    ts, B, D = x_ref.shape
    y = x_ref[...] + enc_ref[...]                                   # (ts, B, D)

    # Global row-major element index -> mask is independent of tiling/grid.
    shape = (ts, B, D)
    s_i = lax.broadcasted_iota(jnp.int32, shape, 0)
    b_i = lax.broadcasted_iota(jnp.int32, shape, 1)
    d_i = lax.broadcasted_iota(jnp.int32, shape, 2)
    base = pl.program_id(0) * jnp.int32(ts * B * D)
    idx = base + (s_i * jnp.int32(B) + b_i) * jnp.int32(D) + d_i

    seed = seed_ref[0]
    h = idx * jnp.int32(_C1) + seed * jnp.int32(_C2)
    h = h ^ _shr(h, 16)
    h = h * jnp.int32(_C3)
    h = h ^ _shr(h, 15)
    h = h * jnp.int32(_C4)
    h = h ^ _shr(h, 15)

    keep = h >= jnp.int32(keep_threshold)
    o_ref[...] = jnp.where(keep, y * inv_keep, 0.0).astype(o_ref.dtype)


# ---------------------------------------------------------------------------
# Tiling / budget helpers
# ---------------------------------------------------------------------------
def _round_up(x, m):
    return ((x + m - 1) // m) * m


def _vmem_params(training):
    """(target_block_bytes, vmem_limit_bytes) tuned per TPU generation."""
    try:
        vmem_cap = pltpu.get_tpu_info().vmem_capacity_bytes
    except Exception:                 # non-TPU / interpret backends
        vmem_cap = 64 * 1024 * 1024   # conservative (v7x-sized)
    if vmem_cap >= 100 * 1024 * 1024:                 # v5e / v6e (128 MiB VMEM)
        target, limit = 8 * 1024 * 1024, 96 * 1024 * 1024
    else:                                             # v7x (64 MiB VMEM)
        target, limit = 4 * 1024 * 1024, 48 * 1024 * 1024
    if training:
        # Dropout path also materializes int32 index/hash intermediates
        # (>= block bytes); halve the per-block budget to stay safe.
        target //= 2
    return target, limit


def _choose_seq_tile(S, B, D, itemsize, target_block_bytes):
    """Largest seq tile whose *padded* (ts, B, D) VMEM block ~ target bytes."""
    # (B, D) is the (sublane, lane) slab; pad to the native tile for this dtype.
    sublane_pack = (32 // (8 * itemsize)) * 8 if itemsize <= 4 else 8
    padded_row = _round_up(B, sublane_pack) * _round_up(D, 128) * itemsize
    ts = max(1, target_block_bytes // padded_row)
    ts = min(int(ts), S)
    if ts >= 8:
        ts -= ts % 8              # tidy alignment; tail handled via pl.cdiv grid
    # Keep >= 2 grid blocks when possible so the "parallel" axis can be sharded
    # across both v7x TensorCores (no effect on single-TC v5e/v6e).
    if ts >= S and S > 8:
        ts = _round_up(-(-S // 2), 8)
    return max(1, ts)


# ---------------------------------------------------------------------------
# Wrapper
# ---------------------------------------------------------------------------
def position_encoding_forward(x, encoding, *, dropout_rate=0.1, training=False,
                              seed=0, donate_x=False):
    """x: (S, B, D); encoding: (max_length, 1, D), ideally pre-cast to x.dtype."""
    S, B, D = x.shape
    assert S <= encoding.shape[0], "seq_len exceeds the encoding table length"
    if encoding.dtype != x.dtype:
        # Fallback only — prefer make_position_encoding(dtype=...) at init so no
        # per-call convert/copy is emitted.
        encoding = encoding.astype(x.dtype)

    use_dropout = training and dropout_rate > 0.0
    if use_dropout and dropout_rate >= 1.0:
        return jnp.zeros_like(x)       # torch Dropout(p=1) zeroes everything

    itemsize = jnp.dtype(x.dtype).itemsize
    target_block_bytes, vmem_limit = _vmem_params(use_dropout)
    ts = _choose_seq_tile(S, B, D, itemsize, target_block_bytes)
    grid = (pl.cdiv(S, ts),)                     # partial tail block is clipped
    out_shape = jax.ShapeDtypeStruct((S, B, D), x.dtype)

    compiler_params = pltpu.CompilerParams(
        dimension_semantics=("parallel",),       # blocks are independent
        vmem_limit_bytes=vmem_limit,
    )
    bytes_accessed = (2 * S * B * D + S * D) * itemsize

    if not use_dropout:
        # Eval-mode forward: dropout is the identity.
        return pl.pallas_call(
            _add_posenc_kernel,
            grid=grid,
            in_specs=[pl.BlockSpec((ts, B, D), lambda i: (i, 0, 0)),
                      pl.BlockSpec((ts, 1, D), lambda i: (i, 0, 0))],
            out_specs=pl.BlockSpec((ts, B, D), lambda i: (i, 0, 0)),
            out_shape=out_shape,
            compiler_params=compiler_params,
            cost_estimate=pl.CostEstimate(flops=S * B * D, transcendentals=0,
                                          bytes_accessed=bytes_accessed),
            # Donate x (in-place update) only when the caller actually donates
            # the buffer (e.g. jax.jit(..., donate_argnums)); off by default.
            input_output_aliases=({0: 0} if donate_x else {}),
        )(x, encoding)

    # keep iff hash >= thr (signed int32), thr = rate*2^32 - 2^31 => P(keep)=1-rate.
    thr_u = min(int(round(float(dropout_rate) * 2.0 ** 32)), 2 ** 32 - 1)
    keep_threshold = thr_u - 2 ** 31
    inv_keep = 1.0 / (1.0 - float(dropout_rate))
    seed_arr = jnp.asarray([seed], dtype=jnp.int32)

    grid_spec = pltpu.PrefetchScalarGridSpec(
        num_scalar_prefetch=1,                      # seed lands in SMEM
        grid=grid,
        in_specs=[pl.BlockSpec((ts, B, D), lambda i, seed_ref: (i, 0, 0)),
                  pl.BlockSpec((ts, 1, D), lambda i, seed_ref: (i, 0, 0))],
        out_specs=pl.BlockSpec((ts, B, D), lambda i, seed_ref: (i, 0, 0)),
    )
    return pl.pallas_call(
        functools.partial(_add_posenc_dropout_kernel,
                          keep_threshold=keep_threshold, inv_keep=inv_keep),
        grid_spec=grid_spec,
        out_shape=out_shape,
        compiler_params=compiler_params,
        cost_estimate=pl.CostEstimate(flops=14 * S * B * D, transcendentals=0,
                                      bytes_accessed=bytes_accessed),
    )(seed_arr, x, encoding)


# ---------------------------------------------------------------------------
# Host-side replay of the in-kernel dropout mask (exact; for tests/debugging).
# ---------------------------------------------------------------------------
def _reference_keep_mask(shape, seed, rate):
    n = int(np.prod(shape))
    idx = np.arange(n, dtype=np.uint32)
    seed_term = np.uint32((int(seed) * 0xC2B2AE35) & 0xFFFFFFFF)
    h = idx * np.uint32(0x9E3779B9) + seed_term
    h = h ^ (h >> np.uint32(16))
    h = h * np.uint32(0x21F0AAAD)
    h = h ^ (h >> np.uint32(15))
    h = h * np.uint32(0x735A2D97)
    h = h ^ (h >> np.uint32(15))
    thr_u = min(int(round(float(rate) * 2.0 ** 32)), 2 ** 32 - 1)
    keep = h.view(np.int32) >= np.int32(thr_u - 2 ** 31)
    return keep.reshape(shape)


# ---------------------------------------------------------------------------
# Demo / correctness check
# ---------------------------------------------------------------------------
if __name__ == "__main__":
    max_length = 75
    embedding_dim = 128   # lane-dense (multiple of 128); model default is 512
    seq_len = 10          # not a multiple of 8 -> exercises 2-block grid + tail clip
    batch = 2
    p = 0.1
    seed = 1234

    key = jax.random.PRNGKey(0)
    x = jax.random.normal(key, (seq_len, batch, embedding_dim), dtype=jnp.float32)
    encoding = make_position_encoding(max_length, embedding_dim, dtype=x.dtype)

    ref = x + encoding[:seq_len]          # (S,1,D) broadcasts over batch

    # Eval-mode forward (dropout = identity) — deterministic, verifiable.
    out = jax.block_until_ready(
        position_encoding_forward(x, encoding, dropout_rate=p, training=False))
    assert out.shape == (seq_len, batch, embedding_dim)
    assert jnp.allclose(out, ref, atol=1e-6), "eval-mode mismatch vs. reference"

    # Training-mode forward — verify exactly against a host-side replay of the
    # in-kernel counter-based hash (mask is grid-invariant by construction).
    out_tr = jax.block_until_ready(
        position_encoding_forward(x, encoding, dropout_rate=p, training=True,
                                  seed=seed))
    keep = _reference_keep_mask((seq_len, batch, embedding_dim), seed, p)
    ref_tr = jnp.where(jnp.asarray(keep), ref * (1.0 / (1.0 - p)), 0.0)
    assert out_tr.shape == (seq_len, batch, embedding_dim)
    assert jnp.allclose(out_tr, ref_tr, atol=1e-5), "dropout path mismatch"
    drop_frac = 1.0 - float(np.mean(keep))
    assert 0.0 < drop_frac < 0.3, "implausible dropout fraction"

    print("KERNEL_OK")
</pallas_src>

<mosaic_0001>
module attributes {stable_mosaic.version = 11 : i64} {
  func.func @_add_posenc_kernel(%arg0: i32, %arg1: memref<8x2x128xf32, #tpu.memory_space<vmem>>, %arg2: memref<8x1x128xf32, #tpu.memory_space<vmem>>, %arg3: memref<8x2x128xf32, #tpu.memory_space<vmem>>) attributes {dimension_semantics = [#tpu.dimension_semantics<parallel>], iteration_bounds = array<i64: 2>, scalar_prefetch = 0 : i64, scratch_operands = 0 : i64, tpu.core_type = #tpu.core_type<tc>, window_params = [{transform_indices = @transform_0, window_bounds = array<i64: 8, 2, 128>}, {transform_indices = @transform_1, window_bounds = array<i64: 8, 1, 128>}, {transform_indices = @transform_2, window_bounds = array<i64: 8, 2, 128>}]} {
    %c0 = arith.constant 0 : index
    %c0_0 = arith.constant 0 : index
    %c0_1 = arith.constant 0 : index
    %0 = vector.load %arg1[%c0, %c0_0, %c0_1] : memref<8x2x128xf32, #tpu.memory_space<vmem>>, vector<8x2x128xf32>
    %c0_2 = arith.constant 0 : index
    %c0_3 = arith.constant 0 : index
    %c0_4 = arith.constant 0 : index
    %1 = vector.load %arg2[%c0_2, %c0_3, %c0_4] : memref<8x1x128xf32, #tpu.memory_space<vmem>>, vector<8x1x128xf32>
    %2 = vector.broadcast %1 : vector<8x1x128xf32> to vector<8x2x128xf32>
    %3 = arith.addf %0, %2 : vector<8x2x128xf32>
    %c0_5 = arith.constant 0 : index
    %c0_6 = arith.constant 0 : index
    %c0_7 = arith.constant 0 : index
    %4 = vector.load %arg3[%c0_5, %c0_6, %c0_7] : memref<8x2x128xf32, #tpu.memory_space<vmem>>, vector<8x2x128xf32>
    tpu.vector_store %arg3[%c0_5, %c0_6, %c0_7], %3 {strides = array<i32>} : memref<8x2x128xf32, #tpu.memory_space<vmem>>, vector<8x2x128xf32>,
    return
  }
  func.func @transform_0(%arg0: i32) -> (i32, i32, i32) {
    %c0_i32 = arith.constant 0 : i32
    %c0_i32_0 = arith.constant 0 : i32
    %c0_i32_1 = arith.constant 0 : i32
    return %arg0, %c0_i32, %c0_i32_0 : i32, i32, i32
  }
  func.func @transform_1(%arg0: i32) -> (i32, i32, i32) {
    %c0_i32 = arith.constant 0 : i32
    %c0_i32_0 = arith.constant 0 : i32
    %c0_i32_1 = arith.constant 0 : i32
    return %arg0, %c0_i32, %c0_i32_0 : i32, i32, i32
  }
  func.func @transform_2(%arg0: i32) -> (i32, i32, i32) {
    %c0_i32 = arith.constant 0 : i32
    %c0_i32_0 = arith.constant 0 : i32
    %c0_i32_1 = arith.constant 0 : i32
    return %arg0, %c0_i32, %c0_i32_0 : i32, i32, i32
  }
}

</mosaic_0001>

<bundles_post_ra>
// kernel: tpu_custom_call.1
= control target key start
LH: loop header
LB: loop body
LE: loop exit
PB: predicated region body
PF: predicated region fallthrough
CT: control target
= control target key end

     0   :  { %7 = vsyncpa [#allocation3], 0  ;;  %s908_s0 = inlined_call_operand.hbm [shape: f32[10,2,128], index: 0, kind: input, shape index: {}]   ;;  %s909_s1 = inlined_call_operand.hbm [shape: f32[75,1,128], index: 1, kind: input, shape index: {}]   ;;  %s910_s2 = inlined_call_operand.hbm [shape: f32[10,2,128], index: 2, kind: output, shape index: {}]  }
   0x1   :  { %9 = vsyncpa [#allocation3 + $0x1], 0 }
   0x2   :  { %10 = vsyncpa [#allocation6], 0 }
   0x3   :  { %12 = vsyncpa [#allocation6 + $0x1], 0 }
   0x4   :  { %13 = vsyncpa [#allocation4], 0 }
   0x5   :  { %15 = vsyncpa [#allocation4 + $0x1], 0  ;;  %s661_s9 = smov 0   ;;  %s663_s10 = smov 0  }
   0x6   :  { %s665_s11 = smov 0   ;;  %s667_s12 = smov 0  }
   0x7 LB: > { %s682_s13 = sadd.s32 4294967295, %s635_s12   ;;  %s424_s14 = sadd.s32 4294967294, %s635_s12   ;;  %s635_s12 = sphi %s667_s12, %s922_s12   ;;  %s631_s11 = sphi %s665_s11, %s921_s11   ;;  %s627_s10 = sphi %s663_s10, %s920_s10   ;;  %s623_s9 = sphi %s661_s9, %s919_s9  }
   0x8   : > { %s686_s15 = sadd.s32 1, %s635_s12   ;;  %s28_s16 = sadd.s32 1, %s631_s11 }
   0x9   : > { %s25_s17 = ssub.s32 %s635_s12, %s686_s15  ;;  %p35_p0 = scmp.ne.s32.totalorder %s631_s11, %s627_s10 }
   0xa   : > { %p26_p1 = scmp.eq.s32.totalorder %s25_s17, 0  ;;  %p36_p2 = scmp.eq.s32.totalorder %s635_s12, 0 }
   0xb   : > { %p41_p3 = scmp.ne.s32.totalorder %s627_s10, %s623_s9  ;;  %p42_p4 = scmp.eq.s32.totalorder %s682_s13, 0 }
   0xc   : > { %s698_s18 = scalar_select %p26_p1, %s631_s11, %s28_s16  }
   0xd   : > { %p700_p5 = por %p36_p2, %p35_p0  ;;  %p704_p6 = por %p42_p4, %p41_p3 }
   0xe   : > { %p91_p7 = scmp.eq.s32.totalorder %s682_s13, 1  ;;  %p97_p8 = scmp.eq.s32.totalorder %s424_s14, 1 }
   0xf   : > { %p911_p11 = scmp.ge.s32.totalorder %s635_s12, 2 }
  0x10   : > { %p709_p9 = por %p91_p7, %p35_p0  ;;  %p713_p10 = por %p97_p8, %p41_p3 }
  0x11   : > { %113 = sbr.rel (%p911_p11) target bundleno = 94 (0x5e), region = 16 }
  0x12   : > { %s914_s21 = scalar_select %p709_p9, 1, 0 }
  0x13   : > { %s915_s22 = scalar_select %p713_p10, 1, 0 }
  0x18   : > { %116 = sbr.rel (!%p700_p5) target bundleno = 59 (0x3b), region = 20  ;;  %s117_s23 = sand.u32 (%p700_p5), 1, %s631_s11  }
  0x19   : > { %s428_s24 = sshll.u32 (%p700_p5), %s635_s12, 3  ;;  %s427_s25 = sshll.u32 (%p700_p5), %s117_s23, 4 }
  0x1a   : > { %s123_s26 = ssub.s32 (%p700_p5), 10, %s428_s24  ;;  %s727_s29 = scalar_lea.sflag (%p700_p5), [#allocation3], %s117_s23 }
  0x1b   : > { %p124_p12 = scmp.lt.s32.totalorder (%p700_p5), %s123_s26, 8  ;;  %s121_s30 = scalar_lea.vmem (%p700_p5), [#allocation2], %s427_s25 }
  0x1f   : > { %s924_s26 = smov (!%p124_p12, %s123_s26), 8 }
  0x20   : > { %s724_s27 = sshll.u32 %s924_s26, 5 }
  0x21   : > { %s128_s28 = ssub.s32 256, %s724_s27 }
  0x22   : > { %129 = vsyncadd %s727_s29, %s128_s28  ;;  %p430_p13 = scmp.ne.s32.totalorder %s724_s27, 0  ;;  %s460_s3 = sshll.u32 %s635_s12, 8 }
  0x23   : > { %s735_s6 = scalar_lea.hbm %s908_s0, %s460_s3  ;;  %s134_s7 = sshll.u32 %s121_s30, 4  ;;  %s737_s7 = int_to_ptr.vmem [resolvable:$true] %s134_s7 }
  0x24   : > { %s509_s8 = scalar_lea.hbm %s735_s6, %s724_s27  ;;  %s513_s17 = scalar_lea.hbm %s908_s0, 320 }
  0x25   : > { %p510_p0 = scmp.ne.s32.totalorder %s735_s6, %s509_s8  ;;  %p514_p3 = scmp.lt.u32.totalorder %s735_s6, %s908_s0 }
  0x26   : > { %p515_p4 = scmp.lt.u32.totalorder %s513_s17, %s509_s8  ;;  %p517_p8 = scmp.lt.u32.totalorder %s509_s8, %s735_s6 }
  0x27   : > { %p511_p1 = pnand %p510_p0, %p430_p13 }
  0x28   : > { %p516_p7 = por %p515_p4, %p514_p3 }
  0x29   : > { %p512_p2 = pneg %p511_p1 }
  0x2a   : > { %p518_p12 = por %p517_p8, %p516_p7 }
  0x2c   : > { %p519_p11 = pnand %p518_p12, %p512_p2 }
  0x2e   : > { %522 = shalt.err (!%p519_p11)
}
  0x2f   : > { %s523_s25 = scalar_lea.vmem %s737_s7, %s724_s27  ;;  %s637_s26 = smov [#allocation2]  }
  0x30   : > { %p524_p0 = scmp.ne.s32.totalorder %s737_s7, %s523_s25  ;;  %s527_s28 = sshll.u32 %s637_s26, 4  ;;  %s528_s28 = int_to_ptr.vmem [resolvable:$false] %s527_s28 }
  0x31   : > { %s529_s30 = scalar_lea.vmem %s528_s28, 512  ;;  %p530_p9 = scmp.lt.s32.totalorder %s737_s7, %s528_s28 }
  0x32   : > { %p525_p1 = pnand %p524_p0, %p430_p13  ;;  %p531_p3 = scmp.lt.s32.totalorder %s529_s30, %s523_s25 }
  0x34   : > { %p526_p10 = pneg %p525_p1  ;;  %p532_p4 = por %p531_p3, %p530_p9 }
  0x36   : > { %p533_p7 = pnand %p532_p4, %p526_p10 }
  0x38   : > { %536 = shalt.err (!%p533_p7)
}
  0x39   : > { %s638_s3 = smov 32   ;;  %s639_s4 = smov 2  }
  0x3a   : > { %140 = dma.hbm_to_vmem [thread:$0]  (%p430_p13), %s735_s6, %s724_s27, %s737_s7, %s727_s29, %s638_s3, %s638_s3, %s639_s4  }
  0x3b PF: > { %143 = sbr.rel (!%p700_p5) target bundleno = 94 (0x5e), region = 24  ;;  %s144_s5 = sand.u32 (%p700_p5), 1, %s631_s11  }
  0x3c   : > { %s435_s8 = sshll.u32 (%p700_p5), %s635_s12, 3  ;;  %s434_s14 = sshll.u32 (%p700_p5), %s144_s5, 3 }
  0x3d   : > { %s150_s16 = ssub.s32 (%p700_p5), 75, %s435_s8  ;;  %s771_s24 = scalar_lea.sflag (%p700_p5), [#allocation6], %s144_s5 }
  0x3e   : > { %p151_p9 = scmp.lt.s32.totalorder (%p700_p5), %s150_s16, 8  ;;  %s148_s27 = scalar_lea.vmem (%p700_p5), [#allocation5], %s434_s14 }
  0x42   : > { %s926_s16 = smov (!%p151_p9, %s150_s16), 8 }
  0x43   : > { %s768_s17 = sshll.u32 %s926_s16, 4 }
  0x44   : > { %s155_s23 = ssub.s32 128, %s768_s17 }
  0x45   : > { %156 = vsyncadd %s771_s24, %s155_s23  ;;  %p437_p5 = scmp.ne.s32.totalorder %s768_s17, 0  ;;  %s461_s19 = sshll.u32 %s635_s12, 7 }
  0x46   : > { %s779_s7 = scalar_lea.hbm %s909_s1, %s461_s19  ;;  %s160_s25 = sshll.u32 %s148_s27, 4  ;;  %s781_s25 = int_to_ptr.vmem [resolvable:$true] %s160_s25 }
  0x47   : > { %s537_s26 = scalar_lea.hbm %s779_s7, %s768_s17  ;;  %s541_s3 = scalar_lea.hbm %s909_s1, 1200 }
  0x48   : > { %p538_p10 = scmp.ne.s32.totalorder %s779_s7, %s537_s26  ;;  %p542_p2 = scmp.lt.u32.totalorder %s779_s7, %s909_s1 }
  0x49   : > { %p543_p8 = scmp.lt.u32.totalorder %s541_s3, %s537_s26  ;;  %p545_p0 = scmp.lt.u32.totalorder %s537_s26, %s779_s7 }
  0x4a   : > { %p539_p11 = pnand %p538_p10, %p437_p5 }
  0x4b   : > { %p544_p12 = por %p543_p8, %p542_p2 }
  0x4c   : > { %p540_p13 = pneg %p539_p11 }
  0x4d   : > { %p546_p1 = por %p545_p0, %p544_p12 }
  0x4f   : > { %p547_p3 = pnand %p546_p1, %p540_p13 }
  0x51   : > { %550 = shalt.err (!%p547_p3)
}
  0x52   : > { %s551_s8 = scalar_lea.vmem %s781_s25, %s768_s17  ;;  %s640_s14 = smov [#allocation5]  }
  0x53   : > { %p552_p4 = scmp.ne.s32.totalorder %s781_s25, %s551_s8  ;;  %s555_s16 = sshll.u32 %s640_s14, 4  ;;  %s556_s16 = int_to_ptr.vmem [resolvable:$false] %s555_s16 }
  0x54   : > { %s557_s23 = scalar_lea.vmem %s556_s16, 256  ;;  %p558_p10 = scmp.lt.s32.totalorder %s781_s25, %s556_s16 }
  0x55   : > { %p553_p7 = pnand %p552_p4, %p437_p5  ;;  %p559_p11 = scmp.lt.s32.totalorder %s557_s23, %s551_s8 }
  0x57   : > { %p554_p9 = pneg %p553_p7  ;;  %p560_p2 = por %p559_p11, %p558_p10 }
  0x59   : > { %p561_p8 = pnand %p560_p2, %p554_p9 }
  0x5b   : > { %564 = shalt.err (!%p561_p8)
}
  0x5c   : > { %s641_s27 = smov 16   ;;  %s642_s19 = smov 1  }
  0x5d   : > { %166 = dma.hbm_to_vmem [thread:$0]  (%p437_p5), %s779_s7, %s768_s17, %s781_s25, %s771_s24, %s641_s27, %s641_s27, %s642_s19  }
  0x5e PF: > { %p439_p13 = scmp.ge.s32.totalorder %s635_s12, 1  ;;  %p168_p12 = scmp.lt.s32.totalorder %s635_s12, 3 }
  0x60   : > { %p169_p0 = pnand %p439_p13, %p168_p12 }
  0x61   : > { %s811_s29 = sand.u32 (!%p169_p0), 1, %s627_s10  }
  0x62   : > { %172 = sbr.rel (%p169_p0) target bundleno = 153 (0x99), region = 28  ;;  %s440_s6 = sshll.u32 (!%p169_p0), %s811_s29, 4 }
  0x63   : > { %s175_s26 = scalar_lea.sflag (!%p169_p0), [#allocation3], %s811_s29  ;;  %s815_s28 = scalar_lea.vmem (!%p169_p0), [#allocation2], %s440_s6 }
  0x69   : > { %610 = dma.done.wait (%p704_p6), %s175_s26, 256  }
  0x6a   : > { %612 = vsyncadd (%p704_p6), %s175_s26, 4294967040  ;;  %s441_s17 = sshll.u32 %s811_s29, 3  ;;  %s184_s24 = scalar_lea.sflag [#allocation6], %s811_s29 }
  0x6b   : > { %s187_s7 = scalar_lea.vmem [#allocation5], %s441_s17 }
  0x6c   : > { %614 = dma.done.wait (%p704_p6), %s184_s24, 128  }
  0x6d   : > { %616 = vsyncadd (%p704_p6), %s184_s24, 4294967168  ;;  %v228_v0 = vld [vmem:[%s815_s28] sm:$0x3]  ;;  %v229_v2 = vld [vmem:[%s815_s28 + $0x2] sm:$0x3]  ;;  %s832_s20 = scalar_lea.vmem [#allocation7], %s440_s6 }
  0x6e   : > { %v443_v1 = vld [vmem:[%s187_s7] ss:$0 sm:$0xff]  ;;  %v444_v4 = vld [vmem:[%s187_s7 + $0x1] ss:$0 sm:$0xff]  ;;  %v230_v5 = vld [vmem:[%s815_s28 + $0x4] sm:$0x3] }
  0x6f   : > { %v292_v3 = vadd.f32 %v443_v1, %v228_v0  ;;  %v445_v6 = vld [vmem:[%s187_s7 + $0x2] ss:$0 sm:$0xff]  ;;  %v293_v7 = vadd.f32 %v444_v4, %v229_v2  ;;  %v231_v9 = vld [vmem:[%s815_s28 + $0x6] sm:$0x3]  ;;  %v446_v10 = vld [vmem:[%s187_s7 + $0x3] ss:$0 sm:$0xff] }
  0x70   : > { %v294_v8 = vadd.f32 %v445_v6, %v230_v5  ;;  %v232_v11 = vld [vmem:[%s815_s28 + $0x8] sm:$0x3]  ;;  %v295_v12 = vadd.f32 %v446_v10, %v231_v9  ;;  %v447_v13 = vld [vmem:[%s187_s7 + $0x4] ss:$0 sm:$0xff]  ;;  %v233_v14 = vld [vmem:[%s815_s28 + $0xa] sm:$0x3] }
  0x71   : > { %300 = vst [vmem:[%s832_s20] sm:$0x3] %v292_v3  ;;  %v448_v15 = vld [vmem:[%s187_s7 + $0x5] ss:$0 sm:$0xff]  ;;  %301 = vst [vmem:[%s832_s20 + $0x2] sm:$0x3] %v293_v7  ;;  %v296_v16 = vadd.f32 %v447_v13, %v232_v11  ;;  %s309_s25 = scalar_lea.sflag [#allocation4], %s811_s29 }
  0x72   : > { %302 = vst [vmem:[%s832_s20 + $0x4] sm:$0x3] %v294_v8  ;;  %v297_v17 = vadd.f32 %v448_v15, %v233_v14  ;;  %v234_v18 = vld [vmem:[%s815_s28 + $0xc] sm:$0x3]  ;;  %v449_v19 = vld [vmem:[%s187_s7 + $0x6] ss:$0 sm:$0xff] }
  0x73   : > { %v235_v20 = vld [vmem:[%s815_s28 + $0xe] sm:$0x3]  ;;  %303 = vst [vmem:[%s832_s20 + $0x6] sm:$0x3] %v295_v12  ;;  %v298_v21 = vadd.f32 %v449_v19, %v234_v18  ;;  %v450_v22 = vld [vmem:[%s187_s7 + $0x7] ss:$0 sm:$0xff] }
  0x74   : > { %304 = vst [vmem:[%s832_s20 + $0x8] sm:$0x3] %v296_v16  ;;  %305 = vst [vmem:[%s832_s20 + $0xa] sm:$0x3] %v297_v17  ;;  %v299_v23 = vadd.f32 %v450_v22, %v235_v20  ;;  %p916_p6 = scmp.ne.s32.totalorder %s914_s21, 0 }
  0x75   : > { %306 = vst [vmem:[%s832_s20 + $0xc] sm:$0x3] %v298_v21  ;;  %s452_s30 = sshll.u32 (%p916_p6), %s682_s13, 3 }
  0x76   : > { %307 = vst [vmem:[%s832_s20 + $0xe] sm:$0x3] %v299_v23  ;;  %315 = sbr.rel (!%p916_p6) target bundleno = 153 (0x99), region = 40  ;;  %s317_s3 = ssub.s32 (%p916_p6), 10, %s452_s30 }
  0x77   : > { %p318_p5 = scmp.lt.s32.totalorder (%p916_p6), %s317_s3, 8 }
  0x7d   : > { %s928_s3 = smov (!%p318_p5, %s317_s3), 8 }
  0x7e   : > { %s849_s4 = sshll.u32 %s928_s3, 5 }
  0x7f   : > { %s322_s5 = ssub.s32 256, %s849_s4 }
  0x80   : > { %323 = vsyncadd %s309_s25, %s322_s5  ;;  %p454_p1 = scmp.ne.s32.totalorder %s849_s4, 0  ;;  %s462_s21 = sshll.u32 %s682_s13, 8 }
  0x81   : > { %s859_s16 = scalar_lea.hbm %s910_s2, %s462_s21  ;;  %s328_s23 = sshll.u32 %s832_s20, 4  ;;  %s862_s23 = int_to_ptr.vmem [resolvable:$true] %s328_s23 }
  0x82   : > { %s565_s27 = scalar_lea.vmem %s862_s23, %s849_s4  ;;  %s643_s19 = smov [#allocation7]  }
  0x83   : > { %p566_p3 = scmp.ne.s32.totalorder %s862_s23, %s565_s27  ;;  %s569_s6 = sshll.u32 %s643_s19, 4  ;;  %s570_s6 = int_to_ptr.vmem [resolvable:$false] %s569_s6 }
  0x84   : > { %s571_s13 = scalar_lea.vmem %s570_s6, 512  ;;  %p572_p9 = scmp.lt.s32.totalorder %s862_s23, %s570_s6 }
  0x85   : > { %p567_p4 = pnand %p566_p3, %p454_p1  ;;  %p573_p10 = scmp.lt.s32.totalorder %s571_s13, %s565_s27 }
  0x87   : > { %p568_p7 = pneg %p567_p4  ;;  %p574_p11 = por %p573_p10, %p572_p9 }
  0x89   : > { %p575_p2 = pnand %p574_p11, %p568_p7 }
  0x8b   : > { %578 = shalt.err (!%p575_p2)
}
  0x8c   : > { %s579_s26 = scalar_lea.hbm %s859_s16, %s849_s4  ;;  %s583_s24 = scalar_lea.hbm %s910_s2, 320 }
  0x8d   : > { %p580_p8 = scmp.ne.s32.totalorder %s859_s16, %s579_s26  ;;  %p584_p0 = scmp.lt.u32.totalorder %s859_s16, %s910_s2 }
  0x8e   : > { %p585_p6 = scmp.lt.u32.totalorder %s583_s24, %s579_s26  ;;  %p587_p3 = scmp.lt.u32.totalorder %s579_s26, %s859_s16 }
  0x8f   : > { %p581_p13 = pnand %p580_p8, %p454_p1 }
  0x90   : > { %p586_p5 = por %p585_p6, %p584_p0 }
  0x91   : > { %p582_p12 = pneg %p581_p13 }
  0x92   : > { %p588_p4 = por %p587_p3, %p586_p5 }
  0x94   : > { %p589_p7 = pnand %p588_p4, %p582_p12 }
  0x96   : > { %592 = shalt.err (!%p589_p7)
}
  0x97   : > { %s644_s30 = smov 32   ;;  %s645_s3 = smov 2  }
  0x98   : > { %334 = dma.vmem_to_hbm [thread:$0]  (%p454_p1), %s862_s23, %s849_s4, %s859_s16, %s309_s25, %s644_s30, %s644_s30, %s645_s3  }
  0x99 PF: > { %s343_s5 = sand.u32 1, %s623_s9   ;;  %p917_p9 = scmp.ne.s32.totalorder %s915_s22, 0 }
  0x9a   : > { %p918_p10 = scmp.ge.s32.totalorder %s635_s12, 2  ;;  %s344_s21 = scalar_lea.sflag [#allocation4], %s343_s5 }
  0x9c   : > { %p467_p11 = pnand %p918_p10, %p917_p9 }
  0x9e   : > { %618 = dma.done.wait (!%p467_p11), %s344_s21, 256  }
  0x9f   : > { %620 = vsyncadd (!%p467_p11), %s344_s21, 4294967040  ;;  %p18_p2 = scmp.ge.s32.totalorder %s686_s15, 4   ;;  %s919_s9 = smov %s627_s10 }
  0xa0   : > { %s920_s10 = smov %s631_s11  ;;  %s921_s11 = smov %s698_s18 }
  0xa1   : > { %s922_s12 = smov %s686_s15  ;;  %20 = sbr.rel (!%p18_p2) target bundleno = 7 (0x7), region = 86 }
  0xa8   :  { %349 = vsyncpa [#allocation3], 1 }
  0xa9   :  { %351 = vsyncpa [#allocation3 + $0x1], 1 }
  0xaa   :  { %352 = vsyncpa [#allocation6], 1 }
  0xab   :  { %354 = vsyncpa [#allocation6 + $0x1], 1 }
  0xac   :  { %355 = vsyncpa [#allocation4], 1 }
  0xad   :  { %357 = vsyncpa [#allocation4 + $0x1], 1 }

</bundles_post_ra>
